<compile_context>
chip_gen: v5e
topology: v5e:2x2
jax: 0.10.0
libtpu: 0.0.40
codegen_flags: <defaults>
</compile_context>

<pallas_src>
import functools
import math

import jax
import jax.numpy as jnp
from jax import lax
from jax.experimental import pallas as pl
from jax.experimental.pallas import tpu as pltpu


def _round_up(v, m):
    return (v + m - 1) // m * m


def _transformer_layer_kernel(
    x_ref,                          # (Nb, L, Cp) f32 — Nb batches' rows
    wq_ref, wk_ref, wv_ref,         # (Cp, C) bf16 — fused (Linear ∘ in_proj) weights
    bq_ref, bk_ref, bv_ref,         # (1, C) f32  — in_proj biases (q bias pre-scaled)
    wo_ref, bo_ref,                 # (C, Cp) bf16, (1, Cp) f32 — MHA out_proj
    w1_ref, w2_ref,                 # (Cp, Cp) bf16 — fc1 / fc2 (pre-transposed)
    o_ref,                          # (Nb, L, Cp) f32
    *, H, HD,
):
    x = x_ref[...]                                    # (Nb, L, Cp) f32, residual path
    Nb, L, Cp = x.shape
    rows = Nb * L
    x_rows = x.reshape(rows, Cp)                      # leading-dim merge (layout-safe)
    xb = x_rows.astype(jnp.bfloat16)

    # Fused q/k/v projections over all Nb*L rows at once (scale folded into wq/bq).
    q = jnp.dot(xb, wq_ref[...], preferred_element_type=jnp.float32) + bq_ref[...]
    k = jnp.dot(xb, wk_ref[...], preferred_element_type=jnp.float32) + bk_ref[...]
    v = jnp.dot(xb, wv_ref[...], preferred_element_type=jnp.float32) + bv_ref[...]

    wo = wo_ref[...]                                  # (C, Cp) bf16

    # Per-head attention, batched over the Nb batches; out_proj is accumulated per head
    # against the matching HD rows of W_o (no concatenate, no VMEM scratch).
    acc = None
    for h in range(H):                                # H is tiny -> static unroll
        c0 = h * HD
        qh = q[:, c0:c0 + HD].reshape(Nb, L, HD)
        kh = k[:, c0:c0 + HD].reshape(Nb, L, HD)
        vh = v[:, c0:c0 + HD].reshape(Nb, L, HD)
        s = jnp.einsum("nld,nmd->nlm", qh, kh,
                       preferred_element_type=jnp.float32)            # (Nb, L, L)
        s = s - jnp.max(s, axis=-1, keepdims=True)
        e = jnp.exp(s)
        p = e * pl.reciprocal(jnp.sum(e, axis=-1, keepdims=True), approx=True)
        oh = jnp.einsum("nlm,nmd->nld", p, vh,
                        preferred_element_type=jnp.float32)           # (Nb, L, HD)
        part = jnp.einsum("nld,dc->nlc", oh.astype(jnp.bfloat16), wo[c0:c0 + HD, :],
                          preferred_element_type=jnp.float32)         # (Nb, L, Cp)
        acc = part if acc is None else acc + part

    # out_proj bias + residual
    x1 = acc + bo_ref[...] + x                        # (Nb, L, Cp) f32
    x1_rows = x1.reshape(rows, Cp)

    # feed-forward fc2(fc1(x)) + residual (no activation, matching the reference)
    h1 = jnp.dot(x1_rows.astype(jnp.bfloat16), w1_ref[...],
                 preferred_element_type=jnp.float32)
    y = jnp.dot(h1.astype(jnp.bfloat16), w2_ref[...],
                preferred_element_type=jnp.float32) + x1_rows

    o_ref[...] = y.reshape(Nb, L, Cp).astype(o_ref.dtype)


def transformer_layer(x, params, num_heads, *, target_rows=256):
    """x: (L, N, C) float32 (seq, batch, embed — PyTorch MHA default layout)."""
    L, N, C = x.shape
    H = num_heads
    HD = C // H
    assert HD * H == C, "embed dim must be divisible by num_heads"
    assert L % 8 == 0, "seq length must be a multiple of the 8-row sublane tile"

    Cp = _round_up(C, 128)                 # lane-dense channel padding only
    scale = 1.0 / math.sqrt(HD)
    hp = lax.Precision.HIGHEST

    wi = params["in_proj_w"]               # (3C, C)
    bi = params["in_proj_b"]               # (3C,)

    # Host-side fusion: (x @ Wq.T) @ Wiq.T == x @ (Wq.T @ Wiq.T); the 1/sqrt(HD) query
    # scale is folded into the fused query weight and bias.  One-time, f32 HIGHEST.
    wq_f = jnp.matmul(params["wq"].T, wi[:C].T, precision=hp) * scale
    wk_f = jnp.matmul(params["wk"].T, wi[C:2 * C].T, precision=hp)
    wv_f = jnp.matmul(params["wv"].T, wi[2 * C:].T, precision=hp)
    bq = (bi[:C] * scale).reshape(1, C).astype(jnp.float32)
    bk = bi[C:2 * C].reshape(1, C).astype(jnp.float32)
    bv = bi[2 * C:].reshape(1, C).astype(jnp.float32)

    def pad_rows(w):    # (C, C) -> (Cp, C) bf16: pad only the x-channel (input) axis
        return jnp.pad(w, ((0, Cp - C), (0, 0))).astype(jnp.bfloat16)

    def pad_both(w):    # (C, C) -> (Cp, Cp) bf16
        return jnp.pad(w, ((0, Cp - C), (0, Cp - C))).astype(jnp.bfloat16)

    wo_k = jnp.pad(params["wo"].T, ((0, 0), (0, Cp - C))).astype(jnp.bfloat16)  # (C, Cp)
    bo_k = jnp.pad(params["bo"], (0, Cp - C)).reshape(1, Cp).astype(jnp.float32)
    w1_k = pad_both(params["w1"].T)
    w2_k = pad_both(params["w2"].T)

    # --- batch packing: Nb batches per grid step so every GEMM sees M = Nb*L rows ---
    Nb = max(1, min(N, -(-target_rows // L)))
    Np = -(-N // Nb) * Nb
    x2 = jnp.transpose(x, (1, 0, 2))                        # (N, L, C)
    x2 = jnp.pad(x2, ((0, Np - N), (0, 0), (0, Cp - C)))    # (Np, L, Cp); pads are zero

    # VMEM budget: weights/biases + double-buffered x/out blocks + intermediate slack,
    # capped at ~7/8 of the chip's physical VMEM (≈56 MiB v7x, ≈112 MiB v5e/v6e).
    rows = Nb * L
    w_bytes = (3 * Cp * C + C * Cp + 2 * Cp * Cp) * 2            # bf16 weights
    b_bytes = (3 * C + Cp) * 4 + 4096                            # biases (+tile slack)
    io_bytes = 2 * rows * Cp * 4                                 # x block + out block
    inter_bytes = 16 * rows * Cp * 4 + 8 * Nb * L * L * 4        # kernel intermediates
    est = 2 * (w_bytes + b_bytes + io_bytes) + inter_bytes + (4 << 20)
    try:
        vmem_cap = int(pltpu.get_tpu_info().vmem_capacity_bytes)
    except Exception:
        vmem_cap = 64 * 1024 * 1024
    vmem_limit = int(min(max(est, 32 << 20), (vmem_cap * 7) // 8))

    x_spec = pl.BlockSpec((Nb, L, Cp), lambda i: (i, 0, 0))
    qkv_w_spec = pl.BlockSpec((Cp, C), lambda i: (0, 0))      # constant index maps —
    qkv_b_spec = pl.BlockSpec((1, C), lambda i: (0, 0))       # weights stay VMEM-resident
    wo_spec = pl.BlockSpec((C, Cp), lambda i: (0, 0))
    bo_spec = pl.BlockSpec((1, Cp), lambda i: (0, 0))
    ffn_spec = pl.BlockSpec((Cp, Cp), lambda i: (0, 0))

    kernel = functools.partial(_transformer_layer_kernel, H=H, HD=HD)

    out2 = pl.pallas_call(
        kernel,
        out_shape=jax.ShapeDtypeStruct((Np, L, Cp), x.dtype),
        grid=(Np // Nb,),
        in_specs=[x_spec,
                  qkv_w_spec, qkv_w_spec, qkv_w_spec,
                  qkv_b_spec, qkv_b_spec, qkv_b_spec,
                  wo_spec, bo_spec,
                  ffn_spec, ffn_spec],
        out_specs=x_spec,
        compiler_params=pltpu.CompilerParams(
            dimension_semantics=("parallel",),
            vmem_limit_bytes=vmem_limit,
        ),
    )(x2, pad_rows(wq_f), pad_rows(wk_f), pad_rows(wv_f),
      bq, bk, bv, wo_k, bo_k, w1_k, w2_k)

    return jnp.transpose(out2[:N, :, :C], (1, 0, 2))


def transformer_layer_ref(x, params, num_heads):
    """Pure-JAX f32 reference mirroring PyTorch semantics, for verification."""
    with jax.default_matmul_precision("highest"):
        L, N, C = x.shape
        H = num_heads
        HD = C // H
        q = x @ params["wq"].T
        k = x @ params["wk"].T
        v = x @ params["wv"].T
        wi, bi = params["in_proj_w"], params["in_proj_b"]
        q = q @ wi[:C].T + bi[:C]
        k = k @ wi[C:2 * C].T + bi[C:2 * C]
        v = v @ wi[2 * C:].T + bi[2 * C:]
        q = q * (1.0 / math.sqrt(HD))
        qh = q.reshape(L, N, H, HD).transpose(1, 2, 0, 3)   # (N,H,L,HD)
        kh = k.reshape(L, N, H, HD).transpose(1, 2, 0, 3)
        vh = v.reshape(L, N, H, HD).transpose(1, 2, 0, 3)
        s = jnp.einsum("nhld,nhmd->nhlm", qh, kh)
        p = jax.nn.softmax(s, axis=-1)
        o = jnp.einsum("nhlm,nhmd->nhld", p, vh)
        o = o.transpose(2, 0, 1, 3).reshape(L, N, C)
        o = o @ params["wo"].T + params["bo"]
        x = o + x
        x = (x @ params["w1"].T) @ params["w2"].T + x
        return x


def init_params(key, c):
    ks = jax.random.split(key, 9)
    s = 1.0 / math.sqrt(c)
    return {
        "wq": jax.random.normal(ks[0], (c, c), jnp.float32) * s,
        "wk": jax.random.normal(ks[1], (c, c), jnp.float32) * s,
        "wv": jax.random.normal(ks[2], (c, c), jnp.float32) * s,
        "in_proj_w": jax.random.normal(ks[3], (3 * c, c), jnp.float32) * s,
        "in_proj_b": jax.random.normal(ks[4], (3 * c,), jnp.float32) * s,
        "wo": jax.random.normal(ks[5], (c, c), jnp.float32) * s,
        "bo": jax.random.normal(ks[6], (c,), jnp.float32) * s,
        "w1": jax.random.normal(ks[7], (c, c), jnp.float32) * s,
        "w2": jax.random.normal(ks[8], (c, c), jnp.float32) * s,
    }


if __name__ == "__main__":
    L, N, C, H = 8, 2, 32, 4     # seq, batch, channels, heads
    key = jax.random.PRNGKey(0)
    kx, kp = jax.random.split(key)
    x = jax.random.normal(kx, (L, N, C), jnp.float32)
    params = init_params(kp, C)

    out = jax.block_until_ready(transformer_layer(x, params, num_heads=H))
    ref = jax.block_until_ready(transformer_layer_ref(x, params, num_heads=H))

    assert out.shape == (L, N, C)
    # bf16 MXU operands (f32 accumulation) + approx reciprocal => slightly looser tol.
    max_err = float(jnp.max(jnp.abs(out - ref)))
    assert max_err < 5e-2, max_err

    print("KERNEL_OK")
</pallas_src>

<mosaic_0001>
module attributes {stable_mosaic.version = 11 : i64} {
  func.func @_transformer_layer_kernel(%arg0: i32, %arg1: memref<2x8x128xf32, #tpu.memory_space<vmem>>, %arg2: memref<128x32xbf16, #tpu.memory_space<vmem>>, %arg3: memref<128x32xbf16, #tpu.memory_space<vmem>>, %arg4: memref<128x32xbf16, #tpu.memory_space<vmem>>, %arg5: memref<1x32xf32, #tpu.memory_space<vmem>>, %arg6: memref<1x32xf32, #tpu.memory_space<vmem>>, %arg7: memref<1x32xf32, #tpu.memory_space<vmem>>, %arg8: memref<32x128xbf16, #tpu.memory_space<vmem>>, %arg9: memref<1x128xf32, #tpu.memory_space<vmem>>, %arg10: memref<128x128xbf16, #tpu.memory_space<vmem>>, %arg11: memref<128x128xbf16, #tpu.memory_space<vmem>>, %arg12: memref<2x8x128xf32, #tpu.memory_space<vmem>>) attributes {dimension_semantics = [#tpu.dimension_semantics<parallel>], iteration_bounds = array<i64: 1>, scalar_prefetch = 0 : i64, scratch_operands = 0 : i64, tpu.core_type = #tpu.core_type<tc>, window_params = [{transform_indices = @transform_0, window_bounds = array<i64: 2, 8, 128>}, {pipeline_mode = #tpu.pipeline_mode<synchronous>, transform_indices = @transform_1, window_bounds = array<i64: 128, 32>}, {pipeline_mode = #tpu.pipeline_mode<synchronous>, transform_indices = @transform_2, window_bounds = array<i64: 128, 32>}, {pipeline_mode = #tpu.pipeline_mode<synchronous>, transform_indices = @transform_3, window_bounds = array<i64: 128, 32>}, {pipeline_mode = #tpu.pipeline_mode<synchronous>, transform_indices = @transform_4, window_bounds = array<i64: 1, 32>}, {pipeline_mode = #tpu.pipeline_mode<synchronous>, transform_indices = @transform_5, window_bounds = array<i64: 1, 32>}, {pipeline_mode = #tpu.pipeline_mode<synchronous>, transform_indices = @transform_6, window_bounds = array<i64: 1, 32>}, {pipeline_mode = #tpu.pipeline_mode<synchronous>, transform_indices = @transform_7, window_bounds = array<i64: 32, 128>}, {pipeline_mode = #tpu.pipeline_mode<synchronous>, transform_indices = @transform_8, window_bounds = array<i64: 1, 128>}, {pipeline_mode = #tpu.pipeline_mode<synchronous>, transform_indices = @transform_9, window_bounds = array<i64: 128, 128>}, {pipeline_mode = #tpu.pipeline_mode<synchronous>, transform_indices = @transform_10, window_bounds = array<i64: 128, 128>}, {transform_indices = @transform_11, window_bounds = array<i64: 2, 8, 128>}]} {
    %c0 = arith.constant 0 : index
    %c0_0 = arith.constant 0 : index
    %c0_1 = arith.constant 0 : index
    %0 = vector.load %arg1[%c0, %c0_0, %c0_1] : memref<2x8x128xf32, #tpu.memory_space<vmem>>, vector<2x8x128xf32>
    %1 = vector.shape_cast %0 : vector<2x8x128xf32> to vector<16x128xf32>
    %2 = arith.truncf %1 : vector<16x128xf32> to vector<16x128xbf16>
    %c0_2 = arith.constant 0 : index
    %c0_3 = arith.constant 0 : index
    %3 = vector.load %arg2[%c0_2, %c0_3] : memref<128x32xbf16, #tpu.memory_space<vmem>>, vector<128x32xbf16>
    %cst = arith.constant dense<0.000000e+00> : vector<16x32xf32>
    %4 = tpu.matmul %2, %3, %cst {dimension_numbers = #tpu.dot_dimension_numbers<[1], [0], [0], [1], [0, 0, 1, 1], [], []>} : vector<16x128xbf16>, vector<128x32xbf16>, vector<16x32xf32> -> vector<16x32xf32>
    %c0_4 = arith.constant 0 : index
    %c0_5 = arith.constant 0 : index
    %5 = vector.load %arg5[%c0_4, %c0_5] : memref<1x32xf32, #tpu.memory_space<vmem>>, vector<1x32xf32>
    %6 = vector.broadcast %5 : vector<1x32xf32> to vector<16x32xf32>
    %7 = arith.addf %4, %6 : vector<16x32xf32>
    %c0_6 = arith.constant 0 : index
    %c0_7 = arith.constant 0 : index
    %8 = vector.load %arg3[%c0_6, %c0_7] : memref<128x32xbf16, #tpu.memory_space<vmem>>, vector<128x32xbf16>
    %cst_8 = arith.constant dense<0.000000e+00> : vector<16x32xf32>
    %9 = tpu.matmul %2, %8, %cst_8 {dimension_numbers = #tpu.dot_dimension_numbers<[1], [0], [0], [1], [0, 0, 1, 1], [], []>} : vector<16x128xbf16>, vector<128x32xbf16>, vector<16x32xf32> -> vector<16x32xf32>
    %c0_9 = arith.constant 0 : index
    %c0_10 = arith.constant 0 : index
    %10 = vector.load %arg6[%c0_9, %c0_10] : memref<1x32xf32, #tpu.memory_space<vmem>>, vector<1x32xf32>
    %11 = vector.broadcast %10 : vector<1x32xf32> to vector<16x32xf32>
    %12 = arith.addf %9, %11 : vector<16x32xf32>
    %c0_11 = arith.constant 0 : index
    %c0_12 = arith.constant 0 : index
    %13 = vector.load %arg4[%c0_11, %c0_12] : memref<128x32xbf16, #tpu.memory_space<vmem>>, vector<128x32xbf16>
    %cst_13 = arith.constant dense<0.000000e+00> : vector<16x32xf32>
    %14 = tpu.matmul %2, %13, %cst_13 {dimension_numbers = #tpu.dot_dimension_numbers<[1], [0], [0], [1], [0, 0, 1, 1], [], []>} : vector<16x128xbf16>, vector<128x32xbf16>, vector<16x32xf32> -> vector<16x32xf32>
    %c0_14 = arith.constant 0 : index
    %c0_15 = arith.constant 0 : index
    %15 = vector.load %arg7[%c0_14, %c0_15] : memref<1x32xf32, #tpu.memory_space<vmem>>, vector<1x32xf32>
    %16 = vector.broadcast %15 : vector<1x32xf32> to vector<16x32xf32>
    %17 = arith.addf %14, %16 : vector<16x32xf32>
    %c0_16 = arith.constant 0 : index
    %c0_17 = arith.constant 0 : index
    %18 = vector.load %arg8[%c0_16, %c0_17] : memref<32x128xbf16, #tpu.memory_space<vmem>>, vector<32x128xbf16>
    %19 = vector.extract_strided_slice %7 {offsets = [0, 0], sizes = [16, 8], strides = [1, 1]} : vector<16x32xf32> to vector<16x8xf32>
    %20 = vector.shape_cast %19 : vector<16x8xf32> to vector<2x8x8xf32>
    %21 = vector.extract_strided_slice %12 {offsets = [0, 0], sizes = [16, 8], strides = [1, 1]} : vector<16x32xf32> to vector<16x8xf32>
    %22 = vector.shape_cast %21 : vector<16x8xf32> to vector<2x8x8xf32>
    %23 = vector.extract_strided_slice %17 {offsets = [0, 0], sizes = [16, 8], strides = [1, 1]} : vector<16x32xf32> to vector<16x8xf32>
    %24 = vector.shape_cast %23 : vector<16x8xf32> to vector<2x8x8xf32>
    "tpu.trace_start"() <{level = 10 : i32, message = "nld,nmd->nlm"}> : () -> ()
    %cst_18 = arith.constant dense<0.000000e+00> : vector<2x8x8xf32>
    %25 = tpu.matmul %20, %22, %cst_18 {dimension_numbers = #tpu.dot_dimension_numbers<[2], [2], [1], [1], [0, 0, 0, 1, 1, 1], [0], [0]>} : vector<2x8x8xf32>, vector<2x8x8xf32>, vector<2x8x8xf32> -> vector<2x8x8xf32>
    "tpu.trace_stop"() : () -> ()
    %cst_19 = arith.constant dense<0xFF800000> : vector<2x8xf32>
    %26 = vector.multi_reduction <maximumf>, %25, %cst_19 [2] : vector<2x8x8xf32> to vector<2x8xf32>
    %27 = vector.shape_cast %26 : vector<2x8xf32> to vector<2x8x1xf32>
    %28 = vector.broadcast %27 : vector<2x8x1xf32> to vector<2x8x8xf32>
    %29 = arith.subf %25, %28 : vector<2x8x8xf32>
    %30 = math.exp %29 : vector<2x8x8xf32>
    %cst_20 = arith.constant dense<0.000000e+00> : vector<2x8xf32>
    %31 = vector.multi_reduction <add>, %30, %cst_20 [2] : vector<2x8x8xf32> to vector<2x8xf32>
    %32 = vector.shape_cast %31 : vector<2x8xf32> to vector<2x8x1xf32>
    %33 = tpu.reciprocal %32 {approx = true} : vector<2x8x1xf32> -> vector<2x8x1xf32>
    %34 = vector.broadcast %33 : vector<2x8x1xf32> to vector<2x8x8xf32>
    %35 = arith.mulf %30, %34 : vector<2x8x8xf32>
    "tpu.trace_start"() <{level = 10 : i32, message = "nlm,nmd->nld"}> : () -> ()
    %cst_21 = arith.constant dense<0.000000e+00> : vector<2x8x8xf32>
    %36 = tpu.matmul %35, %24, %cst_21 {dimension_numbers = #tpu.dot_dimension_numbers<[2], [1], [1], [2], [0, 0, 0, 1, 1, 2], [0], [0]>} : vector<2x8x8xf32>, vector<2x8x8xf32>, vector<2x8x8xf32> -> vector<2x8x8xf32>
    "tpu.trace_stop"() : () -> ()
    %37 = arith.truncf %36 : vector<2x8x8xf32> to vector<2x8x8xbf16>
    %38 = vector.extract_strided_slice %18 {offsets = [0, 0], sizes = [8, 128], strides = [1, 1]} : vector<32x128xbf16> to vector<8x128xbf16>
    "tpu.trace_start"() <{level = 10 : i32, message = "nld,dc->nlc"}> : () -> ()
    %cst_22 = arith.constant dense<0.000000e+00> : vector<2x8x128xf32>
    %39 = tpu.matmul %37, %38, %cst_22 {dimension_numbers = #tpu.dot_dimension_numbers<[2], [0], [0, 1], [1], [0, 0, 0, 1, 1, 1], [], []>} : vector<2x8x8xbf16>, vector<8x128xbf16>, vector<2x8x128xf32> -> vector<2x8x128xf32>
    "tpu.trace_stop"() : () -> ()
    %40 = vector.extract_strided_slice %7 {offsets = [0, 8], sizes = [16, 8], strides = [1, 1]} : vector<16x32xf32> to vector<16x8xf32>
    %41 = vector.shape_cast %40 : vector<16x8xf32> to vector<2x8x8xf32>
    %42 = vector.extract_strided_slice %12 {offsets = [0, 8], sizes = [16, 8], strides = [1, 1]} : vector<16x32xf32> to vector<16x8xf32>
    %43 = vector.shape_cast %42 : vector<16x8xf32> to vector<2x8x8xf32>
    %44 = vector.extract_strided_slice %17 {offsets = [0, 8], sizes = [16, 8], strides = [1, 1]} : vector<16x32xf32> to vector<16x8xf32>
    %45 = vector.shape_cast %44 : vector<16x8xf32> to vector<2x8x8xf32>
    "tpu.trace_start"() <{level = 10 : i32, message = "nld,nmd->nlm"}> : () -> ()
    %cst_23 = arith.constant dense<0.000000e+00> : vector<2x8x8xf32>
    %46 = tpu.matmul %41, %43, %cst_23 {dimension_numbers = #tpu.dot_dimension_numbers<[2], [2], [1], [1], [0, 0, 0, 1, 1, 1], [0], [0]>} : vector<2x8x8xf32>, vector<2x8x8xf32>, vector<2x8x8xf32> -> vector<2x8x8xf32>
    "tpu.trace_stop"() : () -> ()
    %cst_24 = arith.constant dense<0xFF800000> : vector<2x8xf32>
    %47 = vector.multi_reduction <maximumf>, %46, %cst_24 [2] : vector<2x8x8xf32> to vector<2x8xf32>
    %48 = vector.shape_cast %47 : vector<2x8xf32> to vector<2x8x1xf32>
    %49 = vector.broadcast %48 : vector<2x8x1xf32> to vector<2x8x8xf32>
    %50 = arith.subf %46, %49 : vector<2x8x8xf32>
    %51 = math.exp %50 : vector<2x8x8xf32>
    %cst_25 = arith.constant dense<0.000000e+00> : vector<2x8xf32>
    %52 = vector.multi_reduction <add>, %51, %cst_25 [2] : vector<2x8x8xf32> to vector<2x8xf32>
    %53 = vector.shape_cast %52 : vector<2x8xf32> to vector<2x8x1xf32>
    %54 = tpu.reciprocal %53 {approx = true} : vector<2x8x1xf32> -> vector<2x8x1xf32>
    %55 = vector.broadcast %54 : vector<2x8x1xf32> to vector<2x8x8xf32>
    %56 = arith.mulf %51, %55 : vector<2x8x8xf32>
    "tpu.trace_start"() <{level = 10 : i32, message = "nlm,nmd->nld"}> : () -> ()
    %cst_26 = arith.constant dense<0.000000e+00> : vector<2x8x8xf32>
    %57 = tpu.matmul %56, %45, %cst_26 {dimension_numbers = #tpu.dot_dimension_numbers<[2], [1], [1], [2], [0, 0, 0, 1, 1, 2], [0], [0]>} : vector<2x8x8xf32>, vector<2x8x8xf32>, vector<2x8x8xf32> -> vector<2x8x8xf32>
    "tpu.trace_stop"() : () -> ()
    %58 = arith.truncf %57 : vector<2x8x8xf32> to vector<2x8x8xbf16>
    %59 = vector.extract_strided_slice %18 {offsets = [8, 0], sizes = [8, 128], strides = [1, 1]} : vector<32x128xbf16> to vector<8x128xbf16>
    "tpu.trace_start"() <{level = 10 : i32, message = "nld,dc->nlc"}> : () -> ()
    %cst_27 = arith.constant dense<0.000000e+00> : vector<2x8x128xf32>
    %60 = tpu.matmul %58, %59, %cst_27 {dimension_numbers = #tpu.dot_dimension_numbers<[2], [0], [0, 1], [1], [0, 0, 0, 1, 1, 1], [], []>} : vector<2x8x8xbf16>, vector<8x128xbf16>, vector<2x8x128xf32> -> vector<2x8x128xf32>
    "tpu.trace_stop"() : () -> ()
    %61 = arith.addf %39, %60 : vector<2x8x128xf32>
    %62 = vector.extract_strided_slice %7 {offsets = [0, 16], sizes = [16, 8], strides = [1, 1]} : vector<16x32xf32> to vector<16x8xf32>
    %63 = vector.shape_cast %62 : vector<16x8xf32> to vector<2x8x8xf32>
    %64 = vector.extract_strided_slice %12 {offsets = [0, 16], sizes = [16, 8], strides = [1, 1]} : vector<16x32xf32> to vector<16x8xf32>
    %65 = vector.shape_cast %64 : vector<16x8xf32> to vector<2x8x8xf32>
    %66 = vector.extract_strided_slice %17 {offsets = [0, 16], sizes = [16, 8], strides = [1, 1]} : vector<16x32xf32> to vector<16x8xf32>
    %67 = vector.shape_cast %66 : vector<16x8xf32> to vector<2x8x8xf32>
    "tpu.trace_start"() <{level = 10 : i32, message = "nld,nmd->nlm"}> : () -> ()
    %cst_28 = arith.constant dense<0.000000e+00> : vector<2x8x8xf32>
    %68 = tpu.matmul %63, %65, %cst_28 {dimension_numbers = #tpu.dot_dimension_numbers<[2], [2], [1], [1], [0, 0, 0, 1, 1, 1], [0], [0]>} : vector<2x8x8xf32>, vector<2x8x8xf32>, vector<2x8x8xf32> -> vector<2x8x8xf32>
    "tpu.trace_stop"() : () -> ()
    %cst_29 = arith.constant dense<0xFF800000> : vector<2x8xf32>
    %69 = vector.multi_reduction <maximumf>, %68, %cst_29 [2] : vector<2x8x8xf32> to vector<2x8xf32>
    %70 = vector.shape_cast %69 : vector<2x8xf32> to vector<2x8x1xf32>
    %71 = vector.broadcast %70 : vector<2x8x1xf32> to vector<2x8x8xf32>
    %72 = arith.subf %68, %71 : vector<2x8x8xf32>
    %73 = math.exp %72 : vector<2x8x8xf32>
    %cst_30 = arith.constant dense<0.000000e+00> : vector<2x8xf32>
    %74 = vector.multi_reduction <add>, %73, %cst_30 [2] : vector<2x8x8xf32> to vector<2x8xf32>
    %75 = vector.shape_cast %74 : vector<2x8xf32> to vector<2x8x1xf32>
    %76 = tpu.reciprocal %75 {approx = true} : vector<2x8x1xf32> -> vector<2x8x1xf32>
    %77 = vector.broadcast %76 : vector<2x8x1xf32> to vector<2x8x8xf32>
    %78 = arith.mulf %73, %77 : vector<2x8x8xf32>
    "tpu.trace_start"() <{level = 10 : i32, message = "nlm,nmd->nld"}> : () -> ()
    %cst_31 = arith.constant dense<0.000000e+00> : vector<2x8x8xf32>
    %79 = tpu.matmul %78, %67, %cst_31 {dimension_numbers = #tpu.dot_dimension_numbers<[2], [1], [1], [2], [0, 0, 0, 1, 1, 2], [0], [0]>} : vector<2x8x8xf32>, vector<2x8x8xf32>, vector<2x8x8xf32> -> vector<2x8x8xf32>
    "tpu.trace_stop"() : () -> ()
    %80 = arith.truncf %79 : vector<2x8x8xf32> to vector<2x8x8xbf16>
    %81 = vector.extract_strided_slice %18 {offsets = [16, 0], sizes = [8, 128], strides = [1, 1]} : vector<32x128xbf16> to vector<8x128xbf16>
    "tpu.trace_start"() <{level = 10 : i32, message = "nld,dc->nlc"}> : () -> ()
    %cst_32 = arith.constant dense<0.000000e+00> : vector<2x8x128xf32>
    %82 = tpu.matmul %80, %81, %cst_32 {dimension_numbers = #tpu.dot_dimension_numbers<[2], [0], [0, 1], [1], [0, 0, 0, 1, 1, 1], [], []>} : vector<2x8x8xbf16>, vector<8x128xbf16>, vector<2x8x128xf32> -> vector<2x8x128xf32>
    "tpu.trace_stop"() : () -> ()
    %83 = arith.addf %61, %82 : vector<2x8x128xf32>
    %84 = vector.extract_strided_slice %7 {offsets = [0, 24], sizes = [16, 8], strides = [1, 1]} : vector<16x32xf32> to vector<16x8xf32>
    %85 = vector.shape_cast %84 : vector<16x8xf32> to vector<2x8x8xf32>
    %86 = vector.extract_strided_slice %12 {offsets = [0, 24], sizes = [16, 8], strides = [1, 1]} : vector<16x32xf32> to vector<16x8xf32>
    %87 = vector.shape_cast %86 : vector<16x8xf32> to vector<2x8x8xf32>
    %88 = vector.extract_strided_slice %17 {offsets = [0, 24], sizes = [16, 8], strides = [1, 1]} : vector<16x32xf32> to vector<16x8xf32>
    %89 = vector.shape_cast %88 : vector<16x8xf32> to vector<2x8x8xf32>
    "tpu.trace_start"() <{level = 10 : i32, message = "nld,nmd->nlm"}> : () -> ()
    %cst_33 = arith.constant dense<0.000000e+00> : vector<2x8x8xf32>
    %90 = tpu.matmul %85, %87, %cst_33 {dimension_numbers = #tpu.dot_dimension_numbers<[2], [2], [1], [1], [0, 0, 0, 1, 1, 1], [0], [0]>} : vector<2x8x8xf32>, vector<2x8x8xf32>, vector<2x8x8xf32> -> vector<2x8x8xf32>
    "tpu.trace_stop"() : () -> ()
    %cst_34 = arith.constant dense<0xFF800000> : vector<2x8xf32>
    %91 = vector.multi_reduction <maximumf>, %90, %cst_34 [2] : vector<2x8x8xf32> to vector<2x8xf32>
    %92 = vector.shape_cast %91 : vector<2x8xf32> to vector<2x8x1xf32>
    %93 = vector.broadcast %92 : vector<2x8x1xf32> to vector<2x8x8xf32>
    %94 = arith.subf %90, %93 : vector<2x8x8xf32>
    %95 = math.exp %94 : vector<2x8x8xf32>
    %cst_35 = arith.constant dense<0.000000e+00> : vector<2x8xf32>
    %96 = vector.multi_reduction <add>, %95, %cst_35 [2] : vector<2x8x8xf32> to vector<2x8xf32>
    %97 = vector.shape_cast %96 : vector<2x8xf32> to vector<2x8x1xf32>
    %98 = tpu.reciprocal %97 {approx = true} : vector<2x8x1xf32> -> vector<2x8x1xf32>
    %99 = vector.broadcast %98 : vector<2x8x1xf32> to vector<2x8x8xf32>
    %100 = arith.mulf %95, %99 : vector<2x8x8xf32>
    "tpu.trace_start"() <{level = 10 : i32, message = "nlm,nmd->nld"}> : () -> ()
    %cst_36 = arith.constant dense<0.000000e+00> : vector<2x8x8xf32>
    %101 = tpu.matmul %100, %89, %cst_36 {dimension_numbers = #tpu.dot_dimension_numbers<[2], [1], [1], [2], [0, 0, 0, 1, 1, 2], [0], [0]>} : vector<2x8x8xf32>, vector<2x8x8xf32>, vector<2x8x8xf32> -> vector<2x8x8xf32>
    "tpu.trace_stop"() : () -> ()
    %102 = arith.truncf %101 : vector<2x8x8xf32> to vector<2x8x8xbf16>
    %103 = vector.extract_strided_slice %18 {offsets = [24, 0], sizes = [8, 128], strides = [1, 1]} : vector<32x128xbf16> to vector<8x128xbf16>
    "tpu.trace_start"() <{level = 10 : i32, message = "nld,dc->nlc"}> : () -> ()
    %cst_37 = arith.constant dense<0.000000e+00> : vector<2x8x128xf32>
    %104 = tpu.matmul %102, %103, %cst_37 {dimension_numbers = #tpu.dot_dimension_numbers<[2], [0], [0, 1], [1], [0, 0, 0, 1, 1, 1], [], []>} : vector<2x8x8xbf16>, vector<8x128xbf16>, vector<2x8x128xf32> -> vector<2x8x128xf32>
    "tpu.trace_stop"() : () -> ()
    %105 = arith.addf %83, %104 : vector<2x8x128xf32>
    %c0_38 = arith.constant 0 : index
    %c0_39 = arith.constant 0 : index
    %106 = vector.load %arg9[%c0_38, %c0_39] : memref<1x128xf32, #tpu.memory_space<vmem>>, vector<1x128xf32>
    %107 = vector.shape_cast %106 : vector<1x128xf32> to vector<1x1x128xf32>
    %108 = vector.broadcast %107 : vector<1x1x128xf32> to vector<2x8x128xf32>
    %109 = arith.addf %105, %108 : vector<2x8x128xf32>
    %110 = arith.addf %109, %0 : vector<2x8x128xf32>
    %111 = vector.shape_cast %110 : vector<2x8x128xf32> to vector<16x128xf32>
    %112 = arith.truncf %111 : vector<16x128xf32> to vector<16x128xbf16>
    %c0_40 = arith.constant 0 : index
    %c0_41 = arith.constant 0 : index
    %113 = vector.load %arg10[%c0_40, %c0_41] : memref<128x128xbf16, #tpu.memory_space<vmem>>, vector<128x128xbf16>
    %cst_42 = arith.constant dense<0.000000e+00> : vector<16x128xf32>
    %114 = tpu.matmul %112, %113, %cst_42 {dimension_numbers = #tpu.dot_dimension_numbers<[1], [0], [0], [1], [0, 0, 1, 1], [], []>} : vector<16x128xbf16>, vector<128x128xbf16>, vector<16x128xf32> -> vector<16x128xf32>
    %115 = arith.truncf %114 : vector<16x128xf32> to vector<16x128xbf16>
    %c0_43 = arith.constant 0 : index
    %c0_44 = arith.constant 0 : index
    %116 = vector.load %arg11[%c0_43, %c0_44] : memref<128x128xbf16, #tpu.memory_space<vmem>>, vector<128x128xbf16>
    %cst_45 = arith.constant dense<0.000000e+00> : vector<16x128xf32>
    %117 = tpu.matmul %115, %116, %cst_45 {dimension_numbers = #tpu.dot_dimension_numbers<[1], [0], [0], [1], [0, 0, 1, 1], [], []>} : vector<16x128xbf16>, vector<128x128xbf16>, vector<16x128xf32> -> vector<16x128xf32>
    %118 = arith.addf %117, %111 : vector<16x128xf32>
    %119 = vector.shape_cast %118 : vector<16x128xf32> to vector<2x8x128xf32>
    %c0_46 = arith.constant 0 : index
    %c0_47 = arith.constant 0 : index
    %c0_48 = arith.constant 0 : index
    %120 = vector.load %arg12[%c0_46, %c0_47, %c0_48] : memref<2x8x128xf32, #tpu.memory_space<vmem>>, vector<2x8x128xf32>
    tpu.vector_store %arg12[%c0_46, %c0_47, %c0_48], %119 {strides = array<i32>} : memref<2x8x128xf32, #tpu.memory_space<vmem>>, vector<2x8x128xf32>,
    return
  }
  func.func @transform_0(%arg0: i32) -> (i32, i32, i32) {
    %c0_i32 = arith.constant 0 : i32
    %c0_i32_0 = arith.constant 0 : i32
    %c0_i32_1 = arith.constant 0 : i32
    return %arg0, %c0_i32, %c0_i32_0 : i32, i32, i32
  }
  func.func @transform_1(%arg0: i32) -> (i32, i32) {
    %c0_i32 = arith.constant 0 : i32
    %c0_i32_0 = arith.constant 0 : i32
    %c0_i32_1 = arith.constant 0 : i32
    return %c0_i32, %c0_i32_0 : i32, i32
  }
  func.func @transform_2(%arg0: i32) -> (i32, i32) {
    %c0_i32 = arith.constant 0 : i32
    %c0_i32_0 = arith.constant 0 : i32
    %c0_i32_1 = arith.constant 0 : i32
    return %c0_i32, %c0_i32_0 : i32, i32
  }
  func.func @transform_3(%arg0: i32) -> (i32, i32) {
    %c0_i32 = arith.constant 0 : i32
    %c0_i32_0 = arith.constant 0 : i32
    %c0_i32_1 = arith.constant 0 : i32
    return %c0_i32, %c0_i32_0 : i32, i32
  }
  func.func @transform_4(%arg0: i32) -> (i32, i32) {
    %c0_i32 = arith.constant 0 : i32
    %c0_i32_0 = arith.constant 0 : i32
    %c0_i32_1 = arith.constant 0 : i32
    return %c0_i32, %c0_i32_0 : i32, i32
  }
  func.func @transform_5(%arg0: i32) -> (i32, i32) {
    %c0_i32 = arith.constant 0 : i32
    %c0_i32_0 = arith.constant 0 : i32
    %c0_i32_1 = arith.constant 0 : i32
    return %c0_i32, %c0_i32_0 : i32, i32
  }
  func.func @transform_6(%arg0: i32) -> (i32, i32) {
    %c0_i32 = arith.constant 0 : i32
    %c0_i32_0 = arith.constant 0 : i32
    %c0_i32_1 = arith.constant 0 : i32
    return %c0_i32, %c0_i32_0 : i32, i32
  }
  func.func @transform_7(%arg0: i32) -> (i32, i32) {
    %c0_i32 = arith.constant 0 : i32
    %c0_i32_0 = arith.constant 0 : i32
    %c0_i32_1 = arith.constant 0 : i32
    return %c0_i32, %c0_i32_0 : i32, i32
  }
  func.func @transform_8(%arg0: i32) -> (i32, i32) {
    %c0_i32 = arith.constant 0 : i32
    %c0_i32_0 = arith.constant 0 : i32
    %c0_i32_1 = arith.constant 0 : i32
    return %c0_i32, %c0_i32_0 : i32, i32
  }
  func.func @transform_9(%arg0: i32) -> (i32, i32) {
    %c0_i32 = arith.constant 0 : i32
    %c0_i32_0 = arith.constant 0 : i32
    %c0_i32_1 = arith.constant 0 : i32
    return %c0_i32, %c0_i32_0 : i32, i32
  }
  func.func @transform_10(%arg0: i32) -> (i32, i32) {
    %c0_i32 = arith.constant 0 : i32
    %c0_i32_0 = arith.constant 0 : i32
    %c0_i32_1 = arith.constant 0 : i32
    return %c0_i32, %c0_i32_0 : i32, i32
  }
  func.func @transform_11(%arg0: i32) -> (i32, i32, i32) {
    %c0_i32 = arith.constant 0 : i32
    %c0_i32_0 = arith.constant 0 : i32
    %c0_i32_1 = arith.constant 0 : i32
    return %arg0, %c0_i32, %c0_i32_0 : i32, i32, i32
  }
}

</mosaic_0001>

<bundles_post_ra>
// kernel: tpu_custom_call.1
= control target key start
LH: loop header
LB: loop body
LE: loop exit
PB: predicated region body
PF: predicated region fallthrough
CT: control target
= control target key end

     0   :  { %s1736_s0 = inlined_call_operand.vmem [shape: f32[2,8,128], index: 0, kind: input, shape index: {}]   ;;  %s1737_s1 = inlined_call_operand.vmem [shape: bf16[128,32], index: 1, kind: input, shape index: {}]   ;;  %s1738_s2 = inlined_call_operand.vmem [shape: bf16[128,32], index: 2, kind: input, shape index: {}]   ;;  %s1739_s3 = inlined_call_operand.vmem [shape: bf16[128,32], index: 3, kind: input, shape index: {}]   ;;  %s1740_s4 = inlined_call_operand.vmem [shape: f32[1,32], index: 4, kind: input, shape index: {}]   ;;  %s1741_s5 = inlined_call_operand.vmem [shape: f32[1,32], index: 5, kind: input, shape index: {}]   ;;  %s1742_s6 = inlined_call_operand.vmem [shape: f32[1,32], index: 6, kind: input, shape index: {}]   ;;  %s1743_s7 = inlined_call_operand.vmem [shape: bf16[32,128], index: 7, kind: input, shape index: {}]   ;;  %s1744_s8 = inlined_call_operand.vmem [shape: f32[1,128], index: 8, kind: input, shape index: {}]   ;;  %s1745_s9 = inlined_call_operand.vmem [shape: bf16[128,128], index: 9, kind: input, shape index: {}]   ;;  %s1746_s10 = inlined_call_operand.vmem [shape: bf16[128,128], index: 10, kind: input, shape index: {}]   ;;  %s1747_s11 = inlined_call_operand.hbm [shape: f32[2,8,128], index: 11, kind: output, shape index: {}]  }
   0x1   :  { %v1300_v0 = vld [vmem:[%s1737_s1 + $0x38] sm:$0xff]  ;;  %v1299_v2 = vld [vmem:[%s1737_s1 + $0x30] sm:$0xff]  ;;  %v1298_v6 = vld [vmem:[%s1737_s1 + $0x28] sm:$0xff] }
   0x2   :  { %v1308_v1 = vld [vmem:[%s1738_s2 + $0x38] sm:$0xff]  ;;  %111 = vmatpush.bf16.msra.mxu0 %v1300_v0  ;;  %v1307_v3 = vld [vmem:[%s1738_s2 + $0x30] sm:$0xff]  ;;  %v1306_v7 = vld [vmem:[%s1738_s2 + $0x28] sm:$0xff] }
   0x3   :  { %193 = vmatpush.bf16.msra.mxu1 %v1308_v1  ;;  %v1316_v4 = vld [vmem:[%s1739_s3 + $0x38] sm:$0xff]  ;;  %v1315_v5 = vld [vmem:[%s1739_s3 + $0x30] sm:$0xff]  ;;  %v1297_v8 = vld [vmem:[%s1737_s1 + $0x20] sm:$0xff] }
   0x4   :  { %275 = vmatpush.bf16.msra.mxu2 %v1316_v4  ;;  %v1314_v9 = vld [vmem:[%s1739_s3 + $0x28] sm:$0xff]  ;;  %v1305_v10 = vld [vmem:[%s1738_s2 + $0x20] sm:$0xff] }
   0x6   :  { %112 = vmatpush.bf16.msra.mxu0 %v1299_v2 }
   0x7   :  { %194 = vmatpush.bf16.msra.mxu1 %v1307_v3 }
   0x8   :  { %276 = vmatpush.bf16.msra.mxu2 %v1315_v5 }
   0xa   :  { %113 = vmatpush.bf16.msra.mxu0 %v1298_v6 }
   0xb   :  { %195 = vmatpush.bf16.msra.mxu1 %v1306_v7 }
   0xc   :  { %16 = vsyncpa [#allocation3], 0  ;;  %277 = vmatpush.bf16.msra.mxu2 %v1314_v9  ;;  %v1313_v11 = vld [vmem:[%s1739_s3 + $0x20] sm:$0xff]  ;;  %v1296_v12 = vld [vmem:[%s1737_s1 + $0x18] sm:$0xff]  ;;  %vm293_vm0 = vcmask 64512   ;;  %vm558_vm1 = vcmask 1043456  }
   0xd   :  { %v1304_v13 = vld [vmem:[%s1738_s2 + $0x18] sm:$0xff]  ;;  %v1295_v15 = vld [vmem:[%s1737_s1 + $0x10] sm:$0xff]  ;;  %v1294_v18 = vld [vmem:[%s1737_s1 + $0x8] sm:$0xff]  ;;  %s1404_s27 = smov [#allocation2]   ;;  %s1093_s29 = sshll.u32 %s1747_s11, 4  ;;  %s1094_s29 = int_to_ptr.hbm [resolvable:$true] %s1093_s29 }
   0xe   :  { %114 = vmatpush.bf16.msra.mxu0 %v1297_v8  ;;  %v1312_v14 = vld [vmem:[%s1739_s3 + $0x18] sm:$0xff]  ;;  %v1303_v16 = vld [vmem:[%s1738_s2 + $0x10] sm:$0xff]  ;;  %v1302_v19 = vld [vmem:[%s1738_s2 + $0x8] sm:$0xff] }
   0xf   :  { %196 = vmatpush.bf16.msra.mxu1 %v1305_v10  ;;  %v1311_v17 = vld [vmem:[%s1739_s3 + $0x10] sm:$0xff]  ;;  %v1293_v20 = vld [vmem:[%s1737_s1] sm:$0xff]  ;;  %v1310_v21 = vld [vmem:[%s1739_s3 + $0x8] sm:$0xff] }
  0x10   :  { %278 = vmatpush.bf16.msra.mxu2 %v1313_v11  ;;  %v1301_v22 = vld [vmem:[%s1738_s2] sm:$0xff]  ;;  %v1544_v24 = vld [vmem:[%s1736_s0 + $0x8] sm:$0xff]  ;;  %s1406_s2 = smov 8  }
  0x11   :  { %v1539_v23 = vld [vmem:[%s1736_s0] sm:$0xff] }
  0x12   :  { %115 = vmatpush.bf16.msra.mxu0 %v1296_v12  ;;  %v42_v25 = vpack.c.bf16 %v1544_v24, %v1539_v23  ;;  %v1309_v26 = vld [vmem:[%s1739_s3] sm:$0xff]  ;;  %s1401_s3 = smov 120  }
  0x13   :  { %197 = vmatpush.bf16.msra.mxu1 %v1304_v13  ;;  %v1340_v27 = vld [vmem:[%s1741_s5] ss:$0 sm:$0xff] }
  0x14   :  { %279 = vmatpush.bf16.msra.mxu2 %v1312_v14  ;;  %v1339_v28 = vld [vmem:[%s1740_s4] ss:$0 sm:$0xff]  ;;  %s1402_s4 = smov 112  }
  0x15   :  { %v1341_v33 = vld [vmem:[%s1742_s6] ss:$0 sm:$0xff]  ;;  %s1403_s6 = smov 104  }
  0x16   :  { %116 = vmatpush.bf16.msra.mxu0 %v1295_v15 }
  0x17   :  { %198 = vmatpush.bf16.msra.mxu1 %v1303_v16 }
  0x18   :  { %280 = vmatpush.bf16.msra.mxu2 %v1311_v17 }
  0x1a   :  { %117 = vmatpush.bf16.msra.mxu0 %v1294_v18 }
  0x1b   :  { %199 = vmatpush.bf16.msra.mxu1 %v1302_v19 }
  0x1c   :  { %281 = vmatpush.bf16.msra.mxu2 %v1310_v21 }
  0x1e   :  { %118 = vmatpush.bf16.msra.mxu0 %v1293_v20 }
  0x1f   :  { %200 = vmatpush.bf16.msra.mxu1 %v1301_v22 }
  0x20   :  { %282 = vmatpush.bf16.msra.mxu2 %v1309_v26 }
  0x21   :  { %119 = vmatmul.bf16.vlgmr.msra.gmra.mxu0 %v42_v25 }
  0x22   :  { %201 = vmatmul.bf16.vlgmr.msra.gmra.mxu1 %v42_v25 }
  0x23   :  { %283 = vmatmul.bf16.vlgmr.msra.gmra.mxu2 %v42_v25 }
  0x9e   :  { %v120_v29 = vpop.f32.mrf.mxu0 }
  0x9f   :  { %v202_v30 = vpop.f32.mrf.mxu1  ;;  %v1559_v32 = vadd.f32 %v1339_v28, %v120_v29 }
  0xa0   :  { %v1557_v31 = vadd.f32 %v1340_v27, %v202_v30 }
  0xa2   :  { %418 = vrot.lane.b32.xlu2 %v1557_v31, %s1401_s3  ;;  %1201 = vmatpush.xpose.msk.msra.mxu3 %vm293_vm0, %v1557_v31 }
  0xa5   :  { %1202 = vmatmul.msk.f32.vlgmr.msra.gmra.mxu3 %vm293_vm0, %v1559_v32 }
  0xa6   :  { %v122_v35 = vpop.f32.mrf.mxu0  ;;  %v284_v37 = vpop.f32.mrf.mxu2 }
  0xa7   :  { %v204_v34 = vpop.f32.mrf.mxu1  ;;  %v1576_v38 = vadd.f32 %v1341_v33, %v284_v37  ;;  %v1578_v39 = vadd.f32 %v1339_v28, %v122_v35 }
  0xa8   :  { %v1570_v36 = vadd.f32 %v1340_v27, %v204_v34 }
  0xaa   :  { %1203 = vmatpush.xpose.msk.msrb.mxu3 %vm293_vm0, %v1570_v36  ;;  %416 = vrot.lane.b32.xlu2 %v1559_v32, %s1401_s3 }
  0xad   :  { %1204 = vmatmul.msk.f32.vlgmr.msrb.gmra.mxu3 %vm293_vm0, %v1578_v39 }
  0xae   :  { %386 = vmatpush.msra.mxu3 %v1576_v38  ;;  %v286_v58 = vpop.f32.mrf.mxu2 }
  0xaf   :  { %v1595_v59 = vadd.f32 %v1341_v33, %v286_v58  ;;  %v289_v33 = vld [vmem:[%s1743_s7] sm:$0xf] }
  0xb0   :  { %v585_v34 = vsel %vm558_vm1, %v289_v33, 0 }
  0xb1   :  { %409 = vmatpush.msrb.mxu3 %v1595_v59 }
  0xb2   :  { %444 = vrot.lane.b32.xlu2 %v1578_v39, %s1401_s3 }
  0xba   :  { %495 = vrot.lane.b32.xlu2 %v1576_v38, %s1401_s3 }
  0xc2   :  { %601 = vrot.lane.b32.xlu2 %v1559_v32, %s1402_s4 }
  0xfc   :  { %v419_v40 = vpop.permute.xlu2 %418 }
 0x104   :  { %v417_v41 = vpop.permute.xlu2 %416 }
 0x10c   :  { %v445_v42 = vpop.permute.xlu2 %444 }
 0x114   :  { %v496_v43 = vpop.permute.xlu2 %495 }
 0x115   :  { %516 = vmatpush.msrb.mxu0 %v496_v43 }
 0x11c   :  { %v602_v16 = vpop.permute.xlu2 %601 }
 0x128   :  { %v317_v44 = vpop.f32.mrf.mxu3 }
 0x129   :  { %v346_v45 = vsel %vm293_vm0, %v317_v44, -inf }
 0x12a   :  { %347 = vmax.xlane.f32.xlu0 %v346_v45  ;;  %v290_v45 = vld [vmem:[%s1743_s7 + $0x4] sm:$0xf] }
 0x130   :  { %v343_v46 = vpop.f32.mrf.mxu3 }
 0x131   :  { %v349_v47 = vsel %vm293_vm0, %v343_v46, -inf }
 0x132   :  { %350 = vmax.xlane.f32.xlu0 %v349_v47 }
 0x19d   :  { %v348_v48 = vpop.xlane.xlu0 %347 }
 0x19e   :  { %v352_v49 = vsub.f32 %v317_v44, %v348_v48 }
 0x1a0   :  { %v354_v50 = vmul.f32 1.442695, %v352_v49 }
 0x1a2   :  { %1343 = vpow2.f32 %v354_v50 }
 0x1a5   :  { %v351_v51 = vpop.xlane.xlu0 %350 }
 0x1a6   :  { %v353_v52 = vsub.f32 %v343_v46, %v351_v51  ;;  %v560_v46 = vsel %vm558_vm1, %v290_v45, 0 }
 0x1a7   :  { %569 = vmatpush.bf16.msrb.mxu2 %v560_v46 }
 0x1a8   :  { %v1344_v53 = vpop.eup %1343  ;;  %v356_v54 = vmul.f32 1.442695, %v353_v52 }
 0x1a9   :  { %v358_v55 = vsel %vm293_vm0, %v1344_v53, 0.0 }
 0x1aa   :  { %1345 = vpow2.f32 %v356_v54  ;;  %359 = vadd.xlane.f32.xlu1 %v358_v55 }
 0x1b0   :  { %v1346_v56 = vpop.eup %1345 }
 0x1b1   :  { %v361_v57 = vsel %vm293_vm0, %v1346_v56, 0.0 }
 0x1b2   :  { %362 = vadd.xlane.f32.xlu1 %v361_v57 }
 0x1cb   :  { %446 = vrot.lane.b32.xlu1 %v1570_v36, %s1401_s3 }
 0x21d   :  { %v360_v60 = vpop.xlane.xlu1 %359 }
 0x21e   :  { %1347 = vrcp.f32 %v360_v60 }
 0x224   :  { %v1348_v61 = vpop.eup %1347 }
 0x225   :  { %v366_v62 = vmul.f32 %v1348_v61, %v1344_v53  ;;  %v363_v63 = vpop.xlane.xlu1 %362 }
 0x226   :  { %1349 = vrcp.f32 %v363_v63 }
 0x227   :  { %1205 = vmatmul.msk.f32.vlgmr.msra.gmra.mxu3 %vm293_vm0, %v366_v62 }
 0x228   :  { %1207 = vmatpush.xpose.msk.msra.mxu3 %vm293_vm0, %v419_v40 }
 0x22c   :  { %v1350_v0 = vpop.eup %1349 }
 0x22d   :  { %v367_v1 = vmul.f32 %v1350_v0, %v1346_v56 }
 0x22f   :  { %1206 = vmatmul.msk.f32.vlgmr.msrb.gmra.mxu3 %vm293_vm0, %v367_v1 }
 0x237   :  { %1208 = vmatmul.msk.f32.vlgmr.msra.gmra.mxu3 %vm293_vm0, %v417_v41 }
 0x23d   :  { %v447_v2 = vpop.permute.xlu1 %446 }
 0x23e   :  { %1209 = vmatpush.xpose.msk.msrb.mxu3 %vm293_vm0, %v447_v2 }
 0x241   :  { %1210 = vmatmul.msk.f32.vlgmr.msrb.gmra.mxu3 %vm293_vm0, %v445_v42 }
 0x2aa   :  { %v388_v3 = vpop.f32.mrf.mxu3 }
 0x2ab   :  { %v414_v4 = vpack.c.bf16 %v388_v3, %v388_v3 }
 0x2ad   :  { %v578_v7 = vunpack.c.l.b16 %v414_v4 }
 0x2b2   :  { %v411_v5 = vpop.f32.mrf.mxu3 }
 0x2b3   :  { %v415_v6 = vpack.c.bf16 %v411_v5, %v411_v5 }
 0x2b5   :  { %v579_v8 = vunpack.c.l.b16 %v415_v6 }
 0x2b7   :  { %v580_v9 = vpack.c.b16 %v579_v8, %v578_v7 }
 0x2ba   :  { %v441_v10 = vpop.f32.mrf.mxu3 }
 0x2bb   :  { %v472_v11 = vsel %vm293_vm0, %v441_v10, -inf }
 0x2bc   :  { %473 = vmax.xlane.f32.xlu0 %v472_v11 }
 0x2c4   :  { %v469_v12 = vpop.f32.mrf.mxu3 }
 0x2c5   :  { %v475_v13 = vsel %vm293_vm0, %v469_v12, -inf }
 0x2c6   :  { %476 = vmax.xlane.f32.xlu2 %v475_v13 }
 0x2de   :  { %522 = vrot.lane.b32.xlu2 %v1595_v59, %s1401_s3 }
 0x2e6   :  { %629 = vrot.lane.b32.xlu2 %v1578_v39, %s1402_s4 }
 0x2ee   :  { %762 = vrot.lane.b32.xlu2 %v1557_v31, %s1403_s6 }
 0x2f6   :  { %788 = vrot.lane.b32.xlu2 %v1578_v39, %s1403_s6 }
 0x32f   :  { %v474_v14 = vpop.xlane.xlu0 %473 }
 0x330   :  { %v478_v15 = vsub.f32 %v441_v10, %v474_v14 }
 0x332   :  { %v480_v17 = vmul.f32 1.442695, %v478_v15 }
 0x334   :  { %1351 = vpow2.f32 %v480_v17 }
 0x339   :  { %v477_v18 = vpop.xlane.xlu2 %476 }
 0x33a   :  { %v1352_v19 = vpop.eup %1351  ;;  %v479_v22 = vsub.f32 %v469_v12, %v477_v18 }
 0x33b   :  { %v484_v20 = vsel %vm293_vm0, %v1352_v19, 0.0 }
 0x33c   :  { %485 = vadd.xlane.f32.xlu0 %v484_v20  ;;  %v482_v25 = vmul.f32 1.442695, %v479_v22 }
 0x33e   :  { %1353 = vpow2.f32 %v482_v25 }
 0x341   :  { %v523_v21 = vpop.permute.xlu2 %522 }
 0x342   :  { %543 = vmatpush.msra.mxu3 %v523_v21 }
 0x344   :  { %v1354_v26 = vpop.eup %1353  ;;  %594 = vmatpush.bf16.msrb.mxu3 %v585_v34 }
 0x345   :  { %v487_v27 = vsel %vm293_vm0, %v1354_v26, 0.0 }
 0x350   :  { %603 = vrot.lane.b32.xlu0 %v1557_v31, %s1402_s4 }
 0x37a   :  { %488 = vadd.xlane.f32.xlu0 %v487_v27 }
 0x38e   :  { %679 = vrot.lane.b32.xlu0 %v1576_v38, %s1402_s4 }
 0x396   :  { %790 = vrot.lane.b32.xlu0 %v1570_v36, %s1403_s6 }
 0x3af   :  { %v486_v28 = vpop.xlane.xlu0 %485 }
 0x3b0   :  { %1355 = vrcp.f32 %v486_v28 }
 0x3b6   :  { %v1356_v29 = vpop.eup %1355 }
 0x3b7   :  { %v492_v30 = vmul.f32 %v1356_v29, %v1352_v19 }
 0x3b9   :  { %1211 = vmatmul.msk.f32.vlgmr.msrb.gmra.mxu0 %vm293_vm0, %v492_v30 }
 0x3c2   :  { %v604_v31 = vpop.permute.xlu0 %603 }
 0x3c3   :  { %1215 = vmatpush.xpose.msk.msra.mxu0 %vm293_vm0, %v604_v31  ;;  %v291_v31 = vld [vmem:[%s1743_s7 + $0x8] sm:$0xf] }
 0x3c4   :  { %v742_v33 = vsel %vm558_vm1, %v291_v31, 0 }
 0x3c5   :  { %751 = vmatpush.bf16.msra.mxu2 %v742_v33 }
 0x3c6   :  { %1216 = vmatmul.msk.f32.vlgmr.msra.gmra.mxu0 %vm293_vm0, %v602_v16 }
 0x3ed   :  { %v489_v35 = vpop.xlane.xlu0 %488 }
 0x3ee   :  { %1357 = vrcp.f32 %v489_v35 }
 0x3f4   :  { %v1358_v37 = vpop.eup %1357 }
 0x3f5   :  { %v493_v39 = vmul.f32 %v1358_v37, %v1354_v26 }
 0x3f7   :  { %1212 = vmatmul.msk.f32.vlgmr.msra.gmra.mxu3 %vm293_vm0, %v493_v39 }
 0x3ff   :  { %1214 = vmatmul.msk.bf16.vlgmr.msrb.gmra.mxu3 %vm293_vm0, %v580_v9 }
 0x400   :  { %v680_v40 = vpop.permute.xlu0 %679 }
 0x401   :  { %700 = vmatpush.msrb.mxu0 %v680_v40 }
 0x408   :  { %v791_v41 = vpop.permute.xlu0 %790 }
 0x409   :  { %1224 = vmatpush.xpose.msk.msra.mxu0 %vm293_vm0, %v791_v41 }
 0x436   :  { %v518_v42 = vpop.f32.mrf.mxu0 }
 0x437   :  { %v548_v47 = vpack.c.bf16 %v518_v42, %v518_v42 }
 0x439   :  { %v552_v50 = vunpack.c.l.b16 %v548_v47 }
 0x443   :  { %v626_v43 = vpop.f32.mrf.mxu0 }
 0x444   :  { %v657_v44 = vsel %vm293_vm0, %v626_v43, -inf }
 0x445   :  { %658 = vmax.xlane.f32.xlu1 %v657_v44 }
 0x45e   :  { %631 = vrot.lane.b32.xlu1 %v1570_v36, %s1402_s4  ;;  %v630_v36 = vpop.permute.xlu2 %629 }
 0x466   :  { %v763_v60 = vpop.permute.xlu2 %762 }
 0x46e   :  { %v789_v1 = vpop.permute.xlu2 %788 }
 0x47a   :  { %v545_v48 = vpop.f32.mrf.mxu3 }
 0x47b   :  { %v549_v49 = vpack.c.bf16 %v545_v48, %v545_v48  ;;  %v292_v48 = vld [vmem:[%s1743_s7 + $0xc] sm:$0xf]  ;;  %s1091_s7 = sshll.u32 %s1404_s27, 4  ;;  %s1092_s7 = int_to_ptr.vmem [resolvable:$true] %s1091_s7 }
 0x47d   :  { %v553_v51 = vunpack.c.l.b16 %v549_v49  ;;  %v901_v49 = vsel %vm558_vm1, %v292_v48, 0 }
 0x47f   :  { %v554_v52 = vpack.c.b16 %v553_v51, %v552_v50  ;;  %v1324_v50 = vld [vmem:[%s1745_s9 + $0x38] sm:$0xff]  ;;  %v1323_v51 = vld [vmem:[%s1745_s9 + $0x30] sm:$0xff] }
 0x481   :  { %1213 = vmatmul.msk.bf16.vlgmr.msrb.gmra.mxu2 %vm293_vm0, %v554_v52 }
 0x482   :  { %v1647_v0 = vpop.f32.mrf.mxu3  ;;  %992 = vmatpush.bf16.msrb.mxu2 %v1324_v50 }
 0x486   :  { %993 = vmatpush.bf16.msrb.mxu2 %v1323_v51 }
 0x48a   :  { %v1650_v2 = vpop.f32.mrf.mxu3 }
 0x4b8   :  { %v659_v53 = vpop.xlane.xlu1 %658 }
 0x4b9   :  { %v663_v54 = vsub.f32 %v626_v43, %v659_v53  ;;  %v1322_v53 = vld [vmem:[%s1745_s9 + $0x28] sm:$0xff] }
 0x4ba   :  { %994 = vmatpush.bf16.msrb.mxu2 %v1322_v53 }
 0x4bb   :  { %v665_v55 = vmul.f32 1.442695, %v663_v54 }
 0x4bd   :  { %1359 = vpow2.f32 %v665_v55 }
 0x4c3   :  { %v1360_v56 = vpop.eup %1359 }
 0x4c4   :  { %v669_v57 = vsel %vm293_vm0, %v1360_v56, 0.0 }
 0x4c5   :  { %670 = vadd.xlane.f32.xlu1 %v669_v57  ;;  %v1321_v57 = vld [vmem:[%s1745_s9 + $0x20] sm:$0xff] }
 0x4c6   :  { %995 = vmatpush.bf16.msrb.mxu2 %v1321_v57 }
 0x4d0   :  { %v632_v58 = vpop.permute.xlu1 %631 }
 0x4d1   :  { %1217 = vmatpush.xpose.msk.msra.mxu3 %vm293_vm0, %v632_v58 }
 0x4d4   :  { %1218 = vmatmul.msk.f32.vlgmr.msra.gmra.mxu3 %vm293_vm0, %v630_v36 }
 0x4d5   :  { %1222 = vmatpush.xpose.msk.msrb.mxu3 %vm293_vm0, %v763_v60 }
 0x4de   :  { %760 = vrot.lane.b32.xlu1 %v1559_v32, %s1403_s6 }
 0x538   :  { %v671_v61 = vpop.xlane.xlu1 %670 }
 0x539   :  { %1361 = vrcp.f32 %v671_v61  ;;  %v1320_v61 = vld [vmem:[%s1745_s9 + $0x18] sm:$0xff] }
 0x53a   :  { %996 = vmatpush.bf16.msrb.mxu2 %v1320_v61 }
 0x53f   :  { %v1362_v62 = vpop.eup %1361 }
 0x540   :  { %v677_v63 = vmul.f32 %v1362_v62, %v1360_v56  ;;  %v1319_v62 = vld [vmem:[%s1745_s9 + $0x10] sm:$0xff] }
 0x541   :  { %997 = vmatpush.bf16.msrb.mxu2 %v1319_v62 }
 0x542   :  { %1219 = vmatmul.msk.f32.vlgmr.msrb.gmra.mxu0 %vm293_vm0, %v677_v63  ;;  %v571_v63 = vpop.f32.mrf.mxu2 }
 0x543   :  { %910 = vmatpush.bf16.msrb.mxu0 %v901_v49 }
 0x54a   :  { %1225 = vmatmul.msk.f32.vlgmr.msra.gmra.mxu0 %vm293_vm0, %v789_v1  ;;  %v1318_v1 = vld [vmem:[%s1745_s9 + $0x8] sm:$0xff] }
 0x54b   :  { %998 = vmatpush.bf16.msrb.mxu2 %v1318_v1 }
 0x550   :  { %v761_v3 = vpop.permute.xlu1 %760 }
 0x551   :  { %1223 = vmatmul.msk.f32.vlgmr.msrb.gmra.mxu3 %vm293_vm0, %v761_v3  ;;  %v1317_v3 = vld [vmem:[%s1745_s9] sm:$0xff] }
 0x552   :  { %999 = vmatpush.bf16.msrb.mxu2 %v1317_v3 }
 0x557   :  { %v654_v4 = vpop.f32.mrf.mxu3 }
 0x558   :  { %v660_v5 = vsel %vm293_vm0, %v654_v4, -inf }
 0x559   :  { %661 = vmax.xlane.f32.xlu0 %v660_v5  ;;  %v573_v5 = vpop.f32.mrf.mxu2 }
 0x5bf   :  { %v702_v32 = vpop.f32.mrf.mxu0 }
 0x5c0   :  { %v731_v42 = vpack.c.bf16 %v702_v32, %v702_v32  ;;  %v1331_v32 = vld [vmem:[%s1746_s10 + $0x30] sm:$0xff] }
 0x5c2   :  { %v735_v45 = vunpack.c.l.b16 %v731_v42 }
 0x5c7   :  { %v813_v6 = vpop.f32.mrf.mxu0 }
 0x5c8   :  { %v819_v7 = vsel %vm293_vm0, %v813_v6, -inf }
 0x5c9   :  { %820 = vmax.xlane.f32.xlu1 %v819_v7 }
 0x5cc   :  { %v662_v8 = vpop.xlane.xlu0 %661 }
 0x5cd   :  { %v664_v9 = vsub.f32 %v654_v4, %v662_v8  ;;  %v1332_v4 = vld [vmem:[%s1746_s10 + $0x38] sm:$0xff]  ;;  %v1329_v8 = vld [vmem:[%s1746_s10 + $0x20] sm:$0xff] }
 0x5cf   :  { %v667_v10 = vmul.f32 1.442695, %v664_v9  ;;  %v1328_v9 = vld [vmem:[%s1746_s10 + $0x18] sm:$0xff] }
 0x5d1   :  { %1363 = vpow2.f32 %v667_v10 }
 0x5d4   :  { %v785_v11 = vpop.f32.mrf.mxu3 }
 0x5d5   :  { %v816_v12 = vsel %vm293_vm0, %v785_v11, -inf }
 0x5d6   :  { %817 = vmax.xlane.f32.xlu2 %v816_v12 }
 0x5d7   :  { %v1364_v13 = vpop.eup %1363 }
 0x5d8   :  { %v672_v14 = vsel %vm293_vm0, %v1364_v13, 0.0 }
 0x5d9   :  { %673 = vadd.xlane.f32.xlu0 %v672_v14  ;;  %v599_v14 = vadd.f32 %v1650_v2, %v573_v5  ;;  %v1327_v2 = vld [vmem:[%s1746_s10 + $0x10] sm:$0xff] }
 0x5ed   :  { %705 = vrot.lane.b32.xlu0 %v1595_v59, %s1402_s4 }
 0x63c   :  { %v821_v15 = vpop.xlane.xlu1 %820 }
 0x63d   :  { %v823_v16 = vsub.f32 %v813_v6, %v821_v15  ;;  %v1330_v6 = vld [vmem:[%s1746_s10 + $0x28] sm:$0xff] }
 0x63f   :  { %v826_v17 = vmul.f32 1.442695, %v823_v16  ;;  %v1342_v16 = vld [vmem:[%s1744_s8] ss:$0 sm:$0xff] }
 0x641   :  { %1365 = vpow2.f32 %v826_v17 }
 0x647   :  { %v1366_v18 = vpop.eup %1365 }
 0x648   :  { %v831_v19 = vsel %vm293_vm0, %v1366_v18, 0.0 }
 0x649   :  { %v818_v20 = vpop.xlane.xlu2 %817  ;;  %832 = vadd.xlane.f32.xlu1 %v831_v19 }
 0x64a   :  { %v822_v21 = vsub.f32 %v785_v11, %v818_v20  ;;  %v597_v11 = vadd.f32 %v1647_v0, %v571_v63 }
 0x64c   :  { %v824_v22 = vmul.f32 1.442695, %v822_v21  ;;  %v674_v25 = vpop.xlane.xlu0 %673 }
 0x64e   :  { %1367 = vpow2.f32 %v824_v22 }
 0x64f   :  { %1369 = vrcp.f32 %v674_v25 }
 0x654   :  { %v1368_v26 = vpop.eup %1367 }
 0x655   :  { %v828_v27 = vsel %vm293_vm0, %v1368_v26, 0.0  ;;  %v1370_v28 = vpop.eup %1369 }
 0x656   :  { %829 = vadd.xlane.f32.xlu2 %v828_v27  ;;  %v678_v30 = vmul.f32 %v1370_v28, %v1364_v13  ;;  %v1325_v27 = vld [vmem:[%s1746_s10] sm:$0xff] }
 0x65f   :  { %v706_v29 = vpop.permute.xlu0 %705 }
 0x660   :  { %726 = vmatpush.msrb.mxu1 %v706_v29 }
 0x661   :  { %1220 = vmatmul.msk.f32.vlgmr.msrb.gmra.mxu1 %vm293_vm0, %v678_v30 }
 0x662   :  { %864 = vrot.lane.b32.xlu1 %v1595_v59, %s1403_s6 }
 0x66e   :  { %838 = vrot.lane.b32.xlu2 %v1576_v38, %s1403_s6 }
 0x6bc   :  { %v833_v34 = vpop.xlane.xlu1 %832 }
 0x6c9   :  { %v830_v35 = vpop.xlane.xlu2 %829 }
 0x6ca   :  { %1371 = vrcp.f32 %v830_v35 }
 0x6cb   :  { %1373 = vrcp.f32 %v833_v34 }
 0x6d0   :  { %v1372_v37 = vpop.eup %1371 }
 0x6d1   :  { %v1374_v39 = vpop.eup %1373  ;;  %v836_v40 = vmul.f32 %v1372_v37, %v1368_v26  ;;  %v839_v41 = vpop.permute.xlu2 %838  ;;  %v1326_v26 = vld [vmem:[%s1746_s10 + $0x8] sm:$0xff]  ;;  %s1405_s10 = smov 128  }
 0x6d2   :  { %859 = vmatpush.msra.mxu1 %v839_v41  ;;  %v837_v59 = vmul.f32 %v1374_v39, %v1366_v18 }
 0x6d3   :  { %1226 = vmatmul.msk.f32.vlgmr.msra.gmra.mxu1 %vm293_vm0, %v836_v40 }
 0x6d4   :  { %v865_v38 = vpop.permute.xlu1 %864  ;;  %1071 = vmatpush.bf16.msrb.mxu1 %v1332_v4 }
 0x6d5   :  { %885 = vmatpush.msra.mxu3 %v865_v38 }
 0x6d6   :  { %1227 = vmatmul.msk.f32.vlgmr.msra.gmra.mxu3 %vm293_vm0, %v837_v59 }
 0x6d8   :  { %1072 = vmatpush.bf16.msrb.mxu1 %v1331_v32 }
 0x6dc   :  { %1073 = vmatpush.bf16.msrb.mxu1 %v1330_v6 }
 0x6de   :  { %v728_v43 = vpop.f32.mrf.mxu1 }
 0x6df   :  { %v732_v44 = vpack.c.bf16 %v728_v43, %v728_v43 }
 0x6e0   :  { %1074 = vmatpush.bf16.msrb.mxu1 %v1329_v8 }
 0x6e1   :  { %v736_v46 = vunpack.c.l.b16 %v732_v44 }
 0x6e3   :  { %v737_v47 = vpack.c.b16 %v736_v46, %v735_v45 }
 0x6e4   :  { %1075 = vmatpush.bf16.msrb.mxu1 %v1328_v9 }
 0x6e5   :  { %1221 = vmatmul.msk.bf16.vlgmr.msra.gmra.mxu2 %vm293_vm0, %v737_v47 }
 0x6e8   :  { %1076 = vmatpush.bf16.msrb.mxu1 %v1327_v2 }
 0x6ec   :  { %1077 = vmatpush.bf16.msrb.mxu1 %v1326_v26 }
 0x6f0   :  { %1078 = vmatpush.bf16.msrb.mxu1 %v1325_v27 }
 0x750   :  { %v861_v52 = vpop.f32.mrf.mxu1 }
 0x751   :  { %v890_v54 = vpack.c.bf16 %v861_v52, %v861_v52 }
 0x753   :  { %v894_v36 = vunpack.c.l.b16 %v890_v54 }
 0x759   :  { %v887_v55 = vpop.f32.mrf.mxu3 }
 0x75a   :  { %v891_v56 = vpack.c.bf16 %v887_v55, %v887_v55 }
 0x75c   :  { %v895_v58 = vunpack.c.l.b16 %v891_v56 }
 0x75e   :  { %v896_v60 = vpack.c.b16 %v895_v58, %v894_v36 }
 0x760   :  { %1228 = vmatmul.msk.bf16.vlgmr.msrb.gmra.mxu0 %vm293_vm0, %v896_v60 }
 0x768   :  { %v753_v7 = vpop.f32.mrf.mxu2 }
 0x769   :  { %v758_v12 = vadd.f32 %v753_v7, %v597_v11 }
 0x770   :  { %v755_v13 = vpop.f32.mrf.mxu2 }
 0x771   :  { %v759_v17 = vadd.f32 %v755_v13, %v599_v14 }
 0x7dd   :  { %v912_v10 = vpop.f32.mrf.mxu0 }
 0x7de   :  { %v917_v15 = vadd.f32 %v912_v10, %v758_v12 }
 0x7e0   :  { %v923_v19 = vadd.f32 %v1342_v16, %v917_v15 }
 0x7e2   :  { %v925_v22 = vadd.f32 %v923_v19, %v1539_v23 }
 0x7e5   :  { %v914_v18 = vpop.f32.mrf.mxu0 }
 0x7e6   :  { %v918_v20 = vadd.f32 %v914_v18, %v759_v17 }
 0x7e8   :  { %v924_v21 = vadd.f32 %v1342_v16, %v918_v20 }
 0x7ea   :  { %v926_v25 = vadd.f32 %v924_v21, %v1544_v24 }
 0x7ec   :  { %v927_v0 = vpack.c.bf16 %v926_v25, %v925_v22 }
 0x7ee   :  { %1000 = vmatmul.bf16.vlgmr.msrb.gmra.mxu2 %v927_v0 }
 0x871   :  { %v1001_v23 = vpop.f32.mrf.mxu2 }
 0x879   :  { %v1003_v28 = vpop.f32.mrf.mxu2 }
 0x87a   :  { %v1006_v24 = vpack.c.bf16 %v1003_v28, %v1001_v23 }
 0x87c   :  { %1079 = vmatmul.bf16.vlgmr.msrb.gmra.mxu1 %v1006_v24 }
 0x8f9   :  { %v1080_v29 = vpop.f32.mrf.mxu1 }
 0x8fa   :  { %v1081_v30 = vadd.f32 %v1080_v29, %v925_v22 }
 0x8fc   :  { %1085 = vst [vmem:[#allocation2] sm:$0xff] %v1081_v30 }
 0x901   :  { %v1082_v31 = vpop.f32.mrf.mxu1 }
 0x902   :  { %v1083_v33 = vadd.f32 %v1082_v31, %v926_v25 }
 0x904   :  { %1086 = vst [vmem:[#allocation2 + $0x8] sm:$0xff] %v1083_v33 }
 0x905   :  { %1099 = dma.vmem_to_hbm [thread:$0]  %s1092_s7, 256, %s1094_s29, [#allocation3], %s1405_s10, %s1405_s10, %s1406_s2  }
 0x906   :  { %1399 = dma.done.wait [#allocation3], 256  }
 0x907   :  { %1400 = vsyncadd [#allocation3], 4294967040 }
 0x908   :  { %1104 = vsyncpa [#allocation3], 1 }

</bundles_post_ra>
